<compile_context>
chip_gen: v7x
topology: tpu7x:2x2x1
jax: 0.10.0
libtpu: 0.0.40
codegen_flags: <defaults>
</compile_context>

<pallas_src>
from functools import partial

import jax
import jax.numpy as jnp
from jax.experimental import pallas as pl
from jax.experimental.pallas import tpu as pltpu


# ------------------------------------------------------------------ helpers

def _round_up(x, m):
    return ((x + m - 1) // m) * m


def _argmax_onehot(g, tb, c):
    """First-occurrence argmax one-hot of (tb, c) f32 logits, as f32.
    argmax(softmax(g)) == argmax(g) since softmax is monotone."""
    row_max = jnp.max(g, axis=1, keepdims=True)                          # (TB, 1)
    cls_iota = jax.lax.broadcasted_iota(jnp.int32, (tb, c), 1)           # (TB, C)
    label = jnp.min(jnp.where(g == row_max, cls_iota, c),
                    axis=1, keepdims=True)                               # (TB, 1)
    return (cls_iota == label).astype(jnp.float32)                       # (TB, C)


def _valid_rows(b_real, tb):
    """(tb, 1) f32 validity mask for the current batch tile (zero for rows
    that are batch padding)."""
    tile = pl.program_id(0) * pl.num_programs(1) + pl.program_id(1)
    rows = tile * tb + jax.lax.broadcasted_iota(jnp.int32, (tb, 1), 0)
    return (rows < b_real).astype(jnp.float32)


# ------------------------------------------------------------------ kernels

def classmeans_kernel(b_real, need_mask, g_s_ref, f_s_ref, sums_ref, counts_ref):
    step = pl.program_id(1)

    @pl.when(step == 0)
    def _():
        sums_ref[...] = jnp.zeros_like(sums_ref)
        counts_ref[...] = jnp.zeros_like(counts_ref)

    g_s = g_s_ref[...].astype(jnp.float32)        # (TB, C) f32 for compares
    f_s = f_s_ref[...]                            # (TB, D) bf16 (MXU operand)
    TB, C = g_s.shape

    onehot = _argmax_onehot(g_s, TB, C)           # (TB, C) f32, exact 0/1
    if need_mask:
        onehot = onehot * _valid_rows(b_real, TB)

    # Per-class sums: one bf16 MXU matmul with f32 accumulation (0/1 one-hot is
    # exact in bf16); counts via a cheap sublane reduction.
    sums_ref[...] += jnp.einsum('bc,bd->cd', onehot.astype(f_s.dtype), f_s,
                                preferred_element_type=jnp.float32)      # (C, D)
    counts_ref[...] += jnp.sum(onehot, axis=0, keepdims=True)            # (1, C)


def spl_loss_kernel(inv_batch, b_real, need_mask, fused, *refs):
    if fused:
        g_t_ref, f_t_ref, cmtm_ref, cmtm2_ref, out_ref, acc_ref = refs
    else:
        g_t_ref, f_t_ref, cm_ref, tm_ref, cm2_ref, tm2_ref, out_ref, acc_ref = refs

    step = pl.program_id(1)

    @pl.when(step == 0)
    def _():
        acc_ref[...] = jnp.zeros_like(acc_ref)

    g_t = g_t_ref[...].astype(jnp.float32)        # (TB, C)
    f_t = f_t_ref[...]                            # (TB, D) bf16 (MXU operand)
    TB, C = g_t.shape

    ft32 = f_t.astype(jnp.float32)                # elementwise math stays f32
    x2 = jnp.sum(ft32 * ft32, axis=1, keepdims=True)                    # (TB, 1)

    if fused:
        # Single (TB, 2C) matmul: better 256-wide MXU fill, one constant block.
        xc = jnp.einsum('bd,kd->bk', f_t, cmtm_ref[...],
                        preferred_element_type=jnp.float32)             # (TB, 2C)
        d2 = jnp.maximum(x2 + cmtm2_ref[...] - 2.0 * xc, 0.0)
        d2_min = jnp.minimum(d2[:, :C], d2[:, C:])   # lane-aligned (C % 128 == 0)
    else:
        xc_class = jnp.einsum('bd,cd->bc', f_t, cm_ref[...],
                              preferred_element_type=jnp.float32)       # (TB, C)
        xc_clust = jnp.einsum('bd,cd->bc', f_t, tm_ref[...],
                              preferred_element_type=jnp.float32)       # (TB, C)
        d2_class = jnp.maximum(x2 + cm2_ref[...] - 2.0 * xc_class, 0.0)
        d2_clust = jnp.maximum(x2 + tm2_ref[...] - 2.0 * xc_clust, 0.0)
        d2_min = jnp.minimum(d2_class, d2_clust)

    # max(exp(-sqrt(a)), exp(-sqrt(b))) == exp(-sqrt(min(a, b))) (monotone;
    # equal up to rounding, not bitwise).
    p = jnp.exp(-jnp.sqrt(d2_min))                # (TB, C), values in (0, 1]

    onehot = _argmax_onehot(g_t, TB, C)           # target labels = argmax(g_t)

    # F.cross_entropy(p, label) = mean_b [ logsumexp(p_b) - p_b[label_b] ].
    # p <= 1 so exp(p) <= e: the unstabilized logsumexp is safe -> no row-max
    # pass and no broadcast subtract.
    lse = jnp.log(jnp.sum(jnp.exp(p), axis=1, keepdims=True))           # (TB, 1)
    picked = jnp.sum(p * onehot, axis=1, keepdims=True)                 # (TB, 1)
    per_row = lse - picked
    if need_mask:
        per_row = per_row * _valid_rows(b_real, TB)

    # Wide (TB, 1) accumulator: no per-step cross-sublane reduce, no per-step
    # masked single-lane store.
    acc_ref[...] += per_row

    @pl.when(step == pl.num_programs(1) - 1)
    def _():
        out_ref[...] = jnp.sum(acc_ref[...], axis=0, keepdims=True) * inv_batch


# ------------------------------------------------------------------ glue

def _kmeans_jax(x_f32, x_bf16, k, n_iters=20):
    # TODO(synk): sklearn KMeans(random_state=0) uses k-means++ init + n_init
    # restarts; exact reproduction is not expressible here.  Deterministic
    # Lloyd's k-means, first-k-points init, matmul-form distances with bf16
    # MXU operands + f32 accumulation so the n_iters re-streams of f_t stay at
    # the halved bf16 width.
    centers0 = x_f32[:k]
    x2 = jnp.sum(x_f32 * x_f32, axis=1, keepdims=True)                  # (B, 1)

    def step(centers, _):
        c_bf = centers.astype(jnp.bfloat16)
        c2 = jnp.sum(centers * centers, axis=1)[None, :]                # (1, k)
        d2 = x2 + c2 - 2.0 * jnp.dot(x_bf16, c_bf.T,
                                     preferred_element_type=jnp.float32)
        assign = jnp.argmin(d2, axis=1)                                 # (B,)
        onehot = jax.nn.one_hot(assign, k, dtype=jnp.bfloat16)          # (B, k)
        counts = jnp.sum(onehot.astype(jnp.float32), axis=0)[:, None]   # (k, 1)
        sums = jnp.dot(onehot.T, x_bf16, preferred_element_type=jnp.float32)
        new = jnp.where(counts > 0, sums / jnp.maximum(counts, 1.0), centers)
        return new, None

    centers, _ = jax.lax.scan(step, centers0, None, length=n_iters)
    return centers


def _choose_tiling(b, c, d, budget_bytes=40 << 20):
    """Largest batch tile (multiple of 8, <= 2048) whose double-buffered VMEM
    footprint fits a conservative budget (safe for v7x's 64 MiB physical VMEM),
    plus the zero-padded batch.  Avoids the tiny-tile per-step-overhead regime
    that the old divisor-only fallback could hit."""
    fit = 8
    for cand in (2048, 1024, 512, 256, 128, 64, 32, 16, 8):
        need = (2 * cand * (c * 4 + d * 2)            # 2x buffered g(f32)+f(bf16)
                + 4 * c * d * 2 + 8 * c * 4           # cm/tm (+ norms), 2x buffered
                + cand * 512                          # (TB, 1) f32 scratch, lane-padded
                + (2 << 20))                          # slack
        if need <= budget_bytes:
            fit = cand
            break
    tb = min(fit, _round_up(max(b, 1), 8))
    # Shrink power-of-two tiles if padding waste would exceed half a tile.
    while tb > 128 and _round_up(b, tb) - b >= tb // 2:
        tb //= 2
    return tb, _round_up(b, tb)


def _vmem_limit_bytes(tb, c, d):
    need = (2 * tb * (c * 4 + d * 2)
            + 4 * c * d * 2 + 8 * c * 4
            + c * d * 4 + tb * 512 + (2 << 20))
    return int(min(max(2 * need, 32 << 20), 64 << 20))


def structure_preserve_loss(g_s, f_s, g_t, f_t, kmeans_iters=20):
    B, C = g_s.shape
    _, D = f_s.shape

    TB, B_pad = _choose_tiling(B, C, D)
    n_tiles = B_pad // TB
    # Leading "parallel" axis with per-core partial outputs: on v7x (2 TCs per
    # chip) the batch axis is sharded across both cores; on 1-TC chips it is
    # just a 2-iteration outer loop with negligible overhead.
    NC = 2 if (n_tiles >= 2 and n_tiles % 2 == 0) else 1
    spp = n_tiles // NC
    need_mask = (B_pad != B)

    # bf16 feature stream (halved HBM bytes, ~3x fewer MXU passes); logits stay
    # f32 (tiny, only used for argmax compares).  Elementwise/EUP math in the
    # kernels stays f32 (v5e has no bf16 VPU/EUP).
    f_s_bf = f_s.astype(jnp.bfloat16)
    f_t_bf = f_t.astype(jnp.bfloat16)

    def pad_rows(x):
        return x if B_pad == B else jnp.pad(x, ((0, B_pad - B), (0, 0)))

    g_s_p, f_s_p = pad_rows(g_s), pad_rows(f_s_bf)
    g_t_p, f_t_p = pad_rows(g_t), pad_rows(f_t_bf)

    params = pltpu.CompilerParams(
        dimension_semantics=("parallel", "arbitrary"),
        vmem_limit_bytes=_vmem_limit_bytes(TB, C, D))

    tile_map = lambda s, i: (s * spp + i, 0)
    const_map = lambda s, i: (0, 0)

    # ---- kernel 1: per-class feature sums + counts (partials per shard) ----
    sums, counts = pl.pallas_call(
        partial(classmeans_kernel, B, need_mask),
        out_shape=(jax.ShapeDtypeStruct((NC, C, D), jnp.float32),
                   jax.ShapeDtypeStruct((NC, 1, C), jnp.float32)),
        grid=(NC, spp),
        in_specs=[pl.BlockSpec((TB, C), tile_map),
                  pl.BlockSpec((TB, D), tile_map)],
        out_specs=(pl.BlockSpec((None, C, D), lambda s, i: (s, 0, 0)),
                   pl.BlockSpec((None, 1, C), lambda s, i: (s, 0, 0))),
        compiler_params=params,
        cost_estimate=pl.CostEstimate(
            flops=2 * B_pad * C * D,
            transcendentals=0,
            bytes_accessed=B_pad * (C * 4 + D * 2) + NC * (C * D + C) * 4),
    )(g_s_p, f_s_p)

    sums = jnp.sum(sums, axis=0)                       # (C, D)
    counts = jnp.sum(counts, axis=0)[0][:, None]       # (C, 1)
    # Empty classes keep the torch.zeros row (the reference skips them).
    classmeans = jnp.where(counts > 0, sums / jnp.maximum(counts, 1.0), 0.0)

    # ---- k-means on the (unpadded) target features ----
    targetclassmeans = _kmeans_jax(f_t.astype(jnp.float32), f_t_bf, C,
                                   n_iters=kmeans_iters)

    cm_bf = classmeans.astype(jnp.bfloat16)
    tm_bf = targetclassmeans.astype(jnp.bfloat16)
    # Squared norms in f32 from the bf16-rounded means (consistent with the
    # bf16 MXU cross terms), computed once outside the kernel.
    cm2 = jnp.sum(cm_bf.astype(jnp.float32) ** 2, axis=1)[None, :]      # (1, C)
    tm2 = jnp.sum(tm_bf.astype(jnp.float32) ** 2, axis=1)[None, :]      # (1, C)

    fused = (C % 128 == 0)   # only fuse when the mid-slice stays lane-aligned
    if fused:
        cmtm = jnp.concatenate([cm_bf, tm_bf], axis=0)                  # (2C, D)
        cmtm2 = jnp.concatenate([cm2, tm2], axis=1)                     # (1, 2C)
        const_ops = (cmtm, cmtm2)
        const_specs = [pl.BlockSpec((2 * C, D), const_map),
                       pl.BlockSpec((1, 2 * C), const_map)]
    else:
        const_ops = (cm_bf, tm_bf, cm2, tm2)
        const_specs = [pl.BlockSpec((C, D), const_map),
                       pl.BlockSpec((C, D), const_map),
                       pl.BlockSpec((1, C), const_map),
                       pl.BlockSpec((1, C), const_map)]

    # ---- kernel 2: SPL cross-entropy loss (partials per shard) ----
    partials = pl.pallas_call(
        partial(spl_loss_kernel, 1.0 / float(B), B, need_mask, fused),
        out_shape=jax.ShapeDtypeStruct((NC, 1, 1), jnp.float32),
        grid=(NC, spp),
        in_specs=[pl.BlockSpec((TB, C), tile_map),
                  pl.BlockSpec((TB, D), tile_map)] + const_specs,
        out_specs=pl.BlockSpec((None, 1, 1), lambda s, i: (s, 0, 0)),
        scratch_shapes=[pltpu.VMEM((TB, 1), jnp.float32)],
        compiler_params=params,
        cost_estimate=pl.CostEstimate(
            flops=4 * B_pad * C * D,
            transcendentals=3 * B_pad * C,
            bytes_accessed=B_pad * (C * 4 + D * 2) + 2 * C * (D * 2 + 4) + NC * 4),
    )(g_t_p, f_t_p, *const_ops)

    return jnp.sum(partials)


# ------------------------------------------------------------------ main

if __name__ == "__main__":
    B, C, D = 8, 4, 32          # batch, num_classes, features_dim
    key = jax.random.PRNGKey(0)
    k1, k2, k3, k4 = jax.random.split(key, 4)
    g_s = jax.random.normal(k1, (B, C), dtype=jnp.float32)
    f_s = jax.random.normal(k2, (B, D), dtype=jnp.float32)
    g_t = jax.random.normal(k3, (B, C), dtype=jnp.float32)
    f_t = jax.random.normal(k4, (B, D), dtype=jnp.float32)

    out = structure_preserve_loss(g_s, f_s, g_t, f_t)
    jax.block_until_ready(out)
    assert out.shape == () and jnp.isfinite(out)
    print("KERNEL_OK")
</pallas_src>

<mosaic_0001>
module attributes {stable_mosaic.version = 11 : i64} {
  func.func @classmeans_kernel(%arg0: i32, %arg1: i32, %arg2: memref<8x4xf32, #tpu.memory_space<vmem>>, %arg3: memref<8x32xbf16, #tpu.memory_space<vmem>>, %arg4: memref<1x4x32xf32, #tpu.memory_space<vmem>>, %arg5: memref<1x1x4xf32, #tpu.memory_space<vmem>>) attributes {dimension_semantics = [#tpu.dimension_semantics<parallel>, #tpu.dimension_semantics<arbitrary>], iteration_bounds = array<i64: 1, 1>, scalar_prefetch = 0 : i64, scratch_operands = 0 : i64, tpu.core_type = #tpu.core_type<tc>, window_params = [{transform_indices = @transform_0, window_bounds = array<i64: 8, 4>}, {transform_indices = @transform_1, window_bounds = array<i64: 8, 32>}, {transform_indices = @transform_2, window_bounds = array<i64: 1, 4, 32>}, {transform_indices = @transform_3, window_bounds = array<i64: 1, 1, 4>}]} {
    %c0_i32 = arith.constant 0 : i32
    %0 = arith.cmpi eq, %arg1, %c0_i32 : i32
    %1 = arith.extui %0 : i1 to i32
    %c0_i32_0 = arith.constant 0 : i32
    %2 = arith.cmpi ne, %1, %c0_i32_0 : i32
    scf.if %2 {
      %cst_19 = arith.constant 0.000000e+00 : f32
      %34 = vector.broadcast %cst_19 : f32 to vector<4x32xf32>
      %c0_20 = arith.constant 0 : index
      %c0_21 = arith.constant 0 : index
      %c0_22 = arith.constant 0 : index
      %35 = vector.load %arg4[%c0_20, %c0_21, %c0_22] : memref<1x4x32xf32, #tpu.memory_space<vmem>>, vector<1x4x32xf32>
      %36 = vector.shape_cast %35 : vector<1x4x32xf32> to vector<4x32xf32>
      %37 = vector.shape_cast %34 : vector<4x32xf32> to vector<1x4x32xf32>
      tpu.vector_store %arg4[%c0_20, %c0_21, %c0_22], %37 {strides = array<i32>} : memref<1x4x32xf32, #tpu.memory_space<vmem>>, vector<1x4x32xf32>,
      %cst_23 = arith.constant 0.000000e+00 : f32
      %38 = vector.broadcast %cst_23 : f32 to vector<1x4xf32>
      %c0_24 = arith.constant 0 : index
      %c0_25 = arith.constant 0 : index
      %c0_26 = arith.constant 0 : index
      %39 = vector.load %arg5[%c0_24, %c0_25, %c0_26] : memref<1x1x4xf32, #tpu.memory_space<vmem>>, vector<1x1x4xf32>
      %40 = vector.shape_cast %39 : vector<1x1x4xf32> to vector<1x4xf32>
      %41 = vector.shape_cast %38 : vector<1x4xf32> to vector<1x1x4xf32>
      tpu.vector_store %arg5[%c0_24, %c0_25, %c0_26], %41 {strides = array<i32>} : memref<1x1x4xf32, #tpu.memory_space<vmem>>, vector<1x1x4xf32>,
    } else {
    }
    %c0 = arith.constant 0 : index
    %c0_1 = arith.constant 0 : index
    %3 = vector.load %arg2[%c0, %c0_1] : memref<8x4xf32, #tpu.memory_space<vmem>>, vector<8x4xf32>
    %c0_2 = arith.constant 0 : index
    %c0_3 = arith.constant 0 : index
    %4 = vector.load %arg3[%c0_2, %c0_3] : memref<8x32xbf16, #tpu.memory_space<vmem>>, vector<8x32xbf16>
    %cst = arith.constant dense<0xFF800000> : vector<8xf32>
    %5 = vector.multi_reduction <maximumf>, %3, %cst [1] : vector<8x4xf32> to vector<8xf32>
    %6 = vector.shape_cast %5 : vector<8xf32> to vector<8x1xf32>
    %7 = tpu.iota {dimensions = array<i32: 1>} : vector<8x4xi32>
    %8 = vector.broadcast %6 : vector<8x1xf32> to vector<8x4xf32>
    %9 = arith.cmpf oeq, %3, %8 : vector<8x4xf32>
    %c4_i32 = arith.constant 4 : i32
    %10 = vector.broadcast %c4_i32 : i32 to vector<8x4xi32>
    %11 = arith.select %9, %7, %10 : vector<8x4xi1>, vector<8x4xi32>
    %cst_4 = arith.constant dense<2147483647> : vector<8xi32>
    %12 = vector.multi_reduction <minsi>, %11, %cst_4 [1] : vector<8x4xi32> to vector<8xi32>
    %13 = vector.shape_cast %12 : vector<8xi32> to vector<8x1xi32>
    %14 = vector.broadcast %13 : vector<8x1xi32> to vector<8x4xi32>
    %15 = arith.cmpi eq, %7, %14 : vector<8x4xi32>
    %16 = arith.extui %15 : vector<8x4xi1> to vector<8x4xi32>
    %17 = arith.sitofp %16 : vector<8x4xi32> to vector<8x4xf32>
    %c0_5 = arith.constant 0 : index
    %c0_6 = arith.constant 0 : index
    %c0_7 = arith.constant 0 : index
    %18 = vector.load %arg4[%c0_5, %c0_6, %c0_7] : memref<1x4x32xf32, #tpu.memory_space<vmem>>, vector<1x4x32xf32>
    %19 = vector.shape_cast %18 : vector<1x4x32xf32> to vector<4x32xf32>
    %20 = arith.truncf %17 : vector<8x4xf32> to vector<8x4xbf16>
    "tpu.trace_start"() <{level = 10 : i32, message = "bc,bd->cd"}> : () -> ()
    %cst_8 = arith.constant dense<0.000000e+00> : vector<4x32xf32>
    %21 = tpu.matmul %20, %4, %cst_8 {dimension_numbers = #tpu.dot_dimension_numbers<[0], [0], [1], [1], [0, 1, 1, 1], [], []>} : vector<8x4xbf16>, vector<8x32xbf16>, vector<4x32xf32> -> vector<4x32xf32>
    "tpu.trace_stop"() : () -> ()
    %22 = arith.addf %19, %21 : vector<4x32xf32>
    %c0_9 = arith.constant 0 : index
    %c0_10 = arith.constant 0 : index
    %c0_11 = arith.constant 0 : index
    %23 = vector.load %arg4[%c0_9, %c0_10, %c0_11] : memref<1x4x32xf32, #tpu.memory_space<vmem>>, vector<1x4x32xf32>
    %24 = vector.shape_cast %23 : vector<1x4x32xf32> to vector<4x32xf32>
    %25 = vector.shape_cast %22 : vector<4x32xf32> to vector<1x4x32xf32>
    tpu.vector_store %arg4[%c0_9, %c0_10, %c0_11], %25 {strides = array<i32>} : memref<1x4x32xf32, #tpu.memory_space<vmem>>, vector<1x4x32xf32>,
    %c0_12 = arith.constant 0 : index
    %c0_13 = arith.constant 0 : index
    %c0_14 = arith.constant 0 : index
    %26 = vector.load %arg5[%c0_12, %c0_13, %c0_14] : memref<1x1x4xf32, #tpu.memory_space<vmem>>, vector<1x1x4xf32>
    %27 = vector.shape_cast %26 : vector<1x1x4xf32> to vector<1x4xf32>
    %cst_15 = arith.constant dense<0.000000e+00> : vector<4xf32>
    %28 = vector.multi_reduction <add>, %17, %cst_15 [0] : vector<8x4xf32> to vector<4xf32>
    %29 = vector.shape_cast %28 : vector<4xf32> to vector<1x4xf32>
    %30 = arith.addf %27, %29 : vector<1x4xf32>
    %c0_16 = arith.constant 0 : index
    %c0_17 = arith.constant 0 : index
    %c0_18 = arith.constant 0 : index
    %31 = vector.load %arg5[%c0_16, %c0_17, %c0_18] : memref<1x1x4xf32, #tpu.memory_space<vmem>>, vector<1x1x4xf32>
    %32 = vector.shape_cast %31 : vector<1x1x4xf32> to vector<1x4xf32>
    %33 = vector.shape_cast %30 : vector<1x4xf32> to vector<1x1x4xf32>
    tpu.vector_store %arg5[%c0_16, %c0_17, %c0_18], %33 {strides = array<i32>} : memref<1x1x4xf32, #tpu.memory_space<vmem>>, vector<1x1x4xf32>,
    return
  }
  func.func @transform_0(%arg0: i32, %arg1: i32) -> (i32, i32) {
    %c1_i32 = arith.constant 1 : i32
    %0 = arith.muli %arg0, %c1_i32 : i32
    %1 = arith.addi %0, %arg1 : i32
    %c0_i32 = arith.constant 0 : i32
    %c0_i32_0 = arith.constant 0 : i32
    return %1, %c0_i32 : i32, i32
  }
  func.func @transform_1(%arg0: i32, %arg1: i32) -> (i32, i32) {
    %c1_i32 = arith.constant 1 : i32
    %0 = arith.muli %arg0, %c1_i32 : i32
    %1 = arith.addi %0, %arg1 : i32
    %c0_i32 = arith.constant 0 : i32
    %c0_i32_0 = arith.constant 0 : i32
    return %1, %c0_i32 : i32, i32
  }
  func.func @transform_2(%arg0: i32, %arg1: i32) -> (i32, i32, i32) {
    %c0_i32 = arith.constant 0 : i32
    %c0_i32_0 = arith.constant 0 : i32
    %c0_i32_1 = arith.constant 0 : i32
    return %arg0, %c0_i32, %c0_i32_0 : i32, i32, i32
  }
  func.func @transform_3(%arg0: i32, %arg1: i32) -> (i32, i32, i32) {
    %c0_i32 = arith.constant 0 : i32
    %c0_i32_0 = arith.constant 0 : i32
    %c0_i32_1 = arith.constant 0 : i32
    return %arg0, %c0_i32, %c0_i32_0 : i32, i32, i32
  }
}

</mosaic_0001>

<bundles_post_ra>
// kernel: tpu_custom_call.1
= control target key start
LH: loop header
LB: loop body
LE: loop exit
PB: predicated region body
PF: predicated region fallthrough
CT: control target
= control target key end

     0   :  { %9 = vsyncpa [#allocation3], 0  ;;  %vm60_vm0 = vcmask 31744   ;;  %s330_s0 = inlined_call_operand.vmem [shape: f32[8,4], index: 0, kind: input, shape index: {}]   ;;  %s331_s1 = inlined_call_operand.vmem [shape: bf16[8,32], index: 1, kind: input, shape index: {}]   ;;  %s332_s2 = inlined_call_operand.hbm [shape: f32[1,4,32], index: 2, kind: output, shape index: {0}]   ;;  %s333_s3 = inlined_call_operand.hbm [shape: f32[1,1,4], index: 3, kind: output, shape index: {1}]  }
   0x1   :  { %v58_v0 = vld [vmem:[%s330_s0] sm:$0xff] }
   0x2   :  { %10 = vsyncpa [#allocation5], 0  ;;  %v61_v1 = vsel %vm60_vm0, %v58_v0, -inf  ;;  %v64_v2 = vlaneseq  ;;  %v269_v13 = vmov 0.0   ;;  %vm56_vm3 = vcmask 24576  }
   0x3   :  { %62 = vmax.xlane.f32.xlu0 %v61_v1  ;;  %210 = vmatprep.subr.bf16.mxu0 %v269_v13  ;;  %57 = vst.msk [vmem:[#allocation4] sm:$0x1] %vm56_vm3, %v269_v13  ;;  %v59_v14 = vld [vmem:[%s331_s1] sm:$0xf]  ;;  %vm108_vm4 = vcmask 1043456   ;;  %vm270_vm5 = vmmov 0  }
   0x4   :  { %v65_v3 = vand.u32 127, %v64_v2  ;;  %v110_v15 = vsel %vm108_vm4, %v59_v14, 0  ;;  %212 = vmatprep.mubr.msk.bf16.mxu0 %vm270_vm5, %v269_v13  ;;  %vm54_vm6 = vcmask 257024   ;;  %vm104_vm8 = vcmask 64512   ;;  %s271_s1 = smov [#allocation4]  }
   0x5   :  { %211 = vmatpush3.bf16.msra.mxu0 %v110_v15  ;;  %55 = vst.msk [vmem:[#allocation2] sm:$0xf] %vm54_vm6, %v269_v13  ;;  %s182_s15 = sshll.u32 %s271_s1, 4  ;;  %s183_s15 = int_to_ptr.vmem [resolvable:$true] %s182_s15 }
   0x6   :  { %s221_s16 = scalar_lea.vmem %s183_s15, 16  ;;  %s225_s17 = scalar_lea.vmem %s183_s15, 32 }
   0x7   :  { %p222_p0 = scmp.ne.s32.totalorder %s183_s15, %s221_s16  ;;  %p226_p1 = scmp.lt.s32.totalorder %s183_s15, %s183_s15 }
   0x8   :  { %p227_p2 = scmp.lt.s32.totalorder %s225_s17, %s221_s16 }
   0xa   :  { %v155_v29 = vld [vmem:[#allocation4] sm:$0x1]  ;;  %p228_p3 = por %p227_p2, %p226_p1 }
   0xc   :  { %p229_p4 = pnand %p228_p3, %p222_p0 }
  0x90   :  { %v63_v4 = vpop.xlane.xlu0 %62 }
  0x91   :  { %vm66_vm1 = vcmp.eq.f32.partialorder %v58_v0, %v63_v4 }
  0x92   :  { %v67_v5 = vsel %vm66_vm1, %v65_v3, 4 }
  0x93   :  { %v68_v6 = vsel %vm60_vm0, %v67_v5, 2147483647 }
  0x94   :  { %v70_v7 = vshra.s32 %v68_v6, 16  ;;  %v69_v9 = vand.u32 65535, %v68_v6 }
  0x96   :  { %v72_v8 = vcvt.s32.f32 %v70_v7  ;;  %v71_v11 = vcvt.s32.f32 %v69_v9 }
  0x98   :  { %73 = vmin.xlane.f32.xlu0 %v72_v8 }
 0x125   :  { %v74_v10 = vpop.xlane.xlu0 %73 }
 0x126   :  { %vm75_vm2 = vcmp.eq.f32.partialorder %v72_v8, %v74_v10  ;;  %v80_v16 = vcvt.f32.s32 %v74_v10 }
 0x127   :  { %v76_v12 = vsel %vm75_vm2, %v71_v11, inf }
 0x128   :  { %77 = vmin.xlane.f32.xlu1 %v76_v12  ;;  %v81_v18 = vshll.u32 %v80_v16, 16 }
 0x1b5   :  { %v78_v17 = vpop.xlane.xlu1 %77 }
 0x1b6   :  { %v79_v19 = vcvt.f32.s32 %v78_v17 }
 0x1b8   :  { %v82_v20 = vadd.s32 %v81_v18, %v79_v19 }
 0x1ba   :  { %vm83_vm7 = vcmp.eq.s32.totalorder %v65_v3, %v82_v20 }
 0x1bb   :  { %v206_v21 = vsel %vm83_vm7, 1.0, %v269_v13 }
 0x1bc   :  { %v87_v22 = vpack.c.bf16 %v206_v21, %v206_v21  ;;  %v156_v23 = vsel %vm60_vm0, %v206_v21, 0.0 }
 0x1bd   :  { %v157_v24 = vrot.slane %v156_v23, 4 }
 0x1be   :  { %88 = vxpose.xlu1.c.b16.start.end [1/1] (short) (narrow) %v87_v22, 16 }
 0x1bf   :  { %v158_v25 = vadd.f32 %v157_v24, %v156_v23 }
 0x1c1   :  { %v159_v26 = vrot.slane %v158_v25, 2 }
 0x1c3   :  { %v160_v27 = vadd.f32 %v159_v26, %v158_v25 }
 0x1c5   :  { %v161_v28 = vrot.slane %v160_v27, 1 }
 0x1c7   :  { %v162_v30 = vadd.f32 %v161_v28, %v160_v27 }
 0x1c9   :  { %v163_v31 = vadd.f32 %v162_v30, %v155_v29 }
 0x1cb   :  { %165 = vst.msk [vmem:[#allocation4] sm:$0x1] %vm56_vm3, %v163_v31 }
 0x224   :  { %v96_v32 = vpop.trf.xlu1 }
 0x225   :  { %213 = vmatmul.mubr.msk.bf16.vlgmr.msra.gmra.mrb[0].mxu0 %vm104_vm8, %v96_v32 }
 0x226   :  { %232 = shalt.err (!%p229_p4)
}
 0x227   :  { %s233_s20 = scalar_lea.hbm %s333_s3, 16 }
 0x228   :  { %p234_p5 = scmp.ne.s32.totalorder %s333_s3, %s233_s20  ;;  %p237_p6 = scmp.lt.u32.totalorder %s233_s20, %s333_s3 }
 0x22a   :  { %p239_p7 = pnand %p237_p6, %p234_p5 }
 0x22c   :  { %242 = shalt.err (!%p239_p7)
}
 0x22d   :  { %185 = dma.vmem_to_hbm [thread:$0]  %s183_s15, 16, %s333_s3, [#allocation5]   ;;  %v86_v33 = vld [vmem:[#allocation2] sm:$0xf] }
 0x22e   :  { %s272_s27 = smov [#allocation2]  }
 0x22f   :  { %s172_s28 = sshll.u32 %s272_s27, 4  ;;  %s173_s28 = int_to_ptr.vmem [resolvable:$true] %s172_s28 }
 0x230   :  { %s243_s29 = scalar_lea.vmem %s173_s28, 64  ;;  %p248_p9 = scmp.lt.s32.totalorder %s173_s28, %s173_s28 }
 0x231   :  { %p244_p8 = scmp.ne.s32.totalorder %s173_s28, %s243_s29  ;;  %p249_p10 = scmp.lt.s32.totalorder %s243_s29, %s243_s29 }
 0x233   :  { %p250_p11 = por %p249_p10, %p248_p9 }
 0x235   :  { %p251_p12 = pnand %p250_p11, %p244_p8 }
 0x2f8   :  { %v146_v34 = vpop.f32.mrb[0].mxu0 }
 0x2f9   :  { %v152_v35 = vadd.f32 %v146_v34, %v86_v33  ;;  %v214_v36 = vpop.f32.mrb[1].mxu0 }
 0x2fa   :  { %v149_v37 = vpop.f32.mrb[2].mxu0 }
 0x2fb   :  { %154 = vst.msk [vmem:[#allocation2] sm:$0xf] %vm54_vm6, %v152_v35  ;;  %v215_v38 = vpop.f32.mrb[3].mxu0 }
 0x2fc   :  { %254 = shalt.err (!%p251_p12)
}
 0x2fd   :  { %s255_s4 = scalar_lea.hbm %s332_s2, 64 }
 0x2fe   :  { %p256_p13 = scmp.ne.s32.totalorder %s332_s2, %s255_s4  ;;  %p259_p0 = scmp.lt.u32.totalorder %s255_s4, %s332_s2 }
 0x300   :  { %p261_p1 = pnand %p259_p0, %p256_p13 }
 0x302   :  { %264 = shalt.err (!%p261_p1)
}
 0x303   :  { %175 = dma.vmem_to_hbm [thread:$0]  %s173_s28, 64, %s332_s2, [#allocation3]  }
 0x304   :  { %265 = dma.done.wait [#allocation3], 64  }
 0x305   :  { %266 = vsyncadd [#allocation3], 4294967232 }
 0x306   :  { %267 = dma.done.wait [#allocation5], 16  }
 0x307   :  { %268 = vsyncadd [#allocation5], 4294967280 }
 0x308   :  { %192 = vsyncpa [#allocation3], 1 }
 0x309   :  { %193 = vsyncpa [#allocation5], 1 }

</bundles_post_ra>
